<compile_context>
chip_gen: v5e
topology: v5e:2x2
jax: 0.10.0
libtpu: 0.0.40
codegen_flags: <defaults>
</compile_context>

<pallas_src>
import functools

import jax
import jax.numpy as jnp
from jax.experimental import pallas as pl
from jax.experimental.pallas import tpu as pltpu


def _round_up(v, m):
    return ((v + m - 1) // m) * m


def _choose_ti(I, target):
    """Largest divisor of I that is <= target and lane-aligned (mult. of 256, then 128)."""
    if I <= target:
        return I
    for align in (256, 128):
        t = (min(target, I) // align) * align
        while t >= align:
            if I % t == 0:
                return t
            t -= align
    return I  # full-extent block is always legal (equal to the array dim)


def _select_config(M, H, I, block_m, block_i, cd_bytes):
    """Generation-aware (tm, ti, vmem_limit)."""
    try:
        big_vmem = pltpu.get_tpu_info().vmem_capacity_bytes >= 100 * 1024 * 1024
    except Exception:
        big_vmem = False  # unknown chip -> conservative (v7x-like 64 MiB budget)

    if big_vmem:                                   # v5e / v6e: 128 MiB VMEM per core
        tm_target = 640 if block_m is None else block_m
        ti_target = 512 if block_i is None else block_i
        vmem_limit = 96 * 1024 * 1024
    else:                                          # v7x: 64 MiB VMEM per core
        tm_target = 512 if block_m is None else block_m
        ti_target = 256 if block_i is None else block_i
        vmem_limit = 52 * 1024 * 1024

    ti = _choose_ti(I, ti_target)

    budget = int(vmem_limit * 0.85)                # headroom for compiler scratch
    # Shrink ti if the double-buffered weight slices alone eat >half the budget.
    while ti > 128:
        weight_buf = 2 * (3 * H * ti) * cd_bytes   # gate + up + down slices, 2 buffers
        if weight_buf <= budget // 2:
            break
        new_ti = _choose_ti(I, ti // 2)
        if new_ti >= ti:
            break
        ti = new_ti

    weight_buf = 2 * (3 * H * ti) * cd_bytes
    per_row = H * (4 * cd_bytes + 4)               # x (2 bufs) + out (2 bufs) + f32 acc
    tm_cap = max(64, (budget - weight_buf) // per_row)
    tm = min(tm_target, tm_cap)
    tm = max(16, (tm // 16) * 16)                  # sublane packing for bf16
    tm = min(tm, _round_up(M, 16))                 # clamp for small M (decode)
    return tm, ti, vmem_limit


def _llama_mlp_kernel(x_ref, gw_ref, uw_ref, dw_ref, o_ref, acc_ref):
    """One (tm, H) row tile x one ti-slice of the intermediate dimension."""
    k = pl.program_id(1)

    @pl.when(k == 0)
    def _():
        acc_ref[...] = jnp.zeros_like(acc_ref)

    x = x_ref[...]                                                       # (tm, H)
    gate = jnp.dot(x, gw_ref[...], preferred_element_type=jnp.float32)   # (tm, ti)
    up = jnp.dot(x, uw_ref[...], preferred_element_type=jnp.float32)     # (tm, ti)
    # SiLU(gate) * up in f32 (sigmoid goes to the EUP slot).
    h = (gate * jax.nn.sigmoid(gate)) * up
    acc_ref[...] += jnp.dot(h.astype(dw_ref.dtype), dw_ref[...],
                            preferred_element_type=jnp.float32)          # (tm, H)

    @pl.when(k == pl.num_programs(1) - 1)
    def _():
        o_ref[...] = acc_ref[...].astype(o_ref.dtype)                    # single lane-dense store


@functools.partial(jax.jit, static_argnames=("block_m", "block_i", "compute_dtype"))
def llama_mlp(x, gate_w, up_w, down_w, *, block_m=None, block_i=None,
              compute_dtype=jnp.bfloat16):
    """x: (B, S, H); gate_w/up_w: (H, I); down_w: (I, H). Returns (B, S, H)."""
    B, S, H = x.shape
    Hg, I = gate_w.shape
    assert Hg == H and up_w.shape == (H, I) and down_w.shape == (I, H)

    M = B * S
    out_dtype = x.dtype
    cd_bytes = jnp.dtype(compute_dtype).itemsize

    tm, ti, vmem_limit = _select_config(M, H, I, block_m, block_i, cd_bytes)
    Mp = _round_up(M, tm)
    n_m = Mp // tm
    nk = I // ti

    xc = x.reshape(M, H)
    if xc.dtype != compute_dtype:
        xc = xc.astype(compute_dtype)
    if Mp != M:
        xc = jnp.pad(xc, ((0, Mp - M), (0, 0)))    # zero rows -> zero outputs, sliced off below

    # Weights are streamed as-is (no per-call repack). Casts below are no-ops
    # when the caller already stores weights in compute_dtype (the normal case).
    gw = gate_w if gate_w.dtype == compute_dtype else gate_w.astype(compute_dtype)
    uw = up_w if up_w.dtype == compute_dtype else up_w.astype(compute_dtype)
    dw = down_w if down_w.dtype == compute_dtype else down_w.astype(compute_dtype)

    cost = pl.CostEstimate(
        flops=6 * Mp * H * I,
        transcendentals=Mp * I,
        bytes_accessed=(Mp * H * cd_bytes                          # activations in
                        + n_m * 3 * H * I * cd_bytes               # weights re-streamed per M-tile
                        + Mp * H * jnp.dtype(out_dtype).itemsize), # output
    )

    out2d = pl.pallas_call(
        _llama_mlp_kernel,
        out_shape=jax.ShapeDtypeStruct((Mp, H), out_dtype),
        grid_spec=pltpu.PrefetchScalarGridSpec(
            num_scalar_prefetch=0,
            grid=(n_m, nk),
            in_specs=[
                pl.BlockSpec((tm, H), lambda i, k: (i, 0)),        # activation rows
                pl.BlockSpec((H, ti), lambda i, k: (0, k)),        # gate_proj weight slice
                pl.BlockSpec((H, ti), lambda i, k: (0, k)),        # up_proj weight slice
                pl.BlockSpec((ti, H), lambda i, k: (k, 0)),        # down_proj weight slice
            ],
            out_specs=pl.BlockSpec((tm, H), lambda i, k: (i, 0)),
            scratch_shapes=[pltpu.VMEM((tm, H), jnp.float32)],     # f32 accumulator
        ),
        compiler_params=pltpu.CompilerParams(
            dimension_semantics=("parallel", "arbitrary"),
            vmem_limit_bytes=vmem_limit,
        ),
        cost_estimate=cost,
    )(xc, gw, uw, dw)

    return out2d[:M].reshape(B, S, H)


def _reference_mlp(x, gate_w, up_w, down_w):
    g = jnp.einsum("bsh,hi->bsi", x, gate_w)
    u = jnp.einsum("bsh,hi->bsi", x, up_w)
    h = jax.nn.silu(g) * u
    return jnp.einsum("bsi,ih->bsh", h, down_w)


if __name__ == "__main__":
    # Small, module-consistent shapes: batch=2, seq=8, hidden=32, intermediate=64.
    B, S, H, I = 2, 8, 32, 64
    key = jax.random.PRNGKey(0)
    kx, kg, ku, kd = jax.random.split(key, 4)

    # bf16 parameters / activations (MXU-native); reference computed in f32 from
    # the same bf16 values to isolate kernel rounding from input quantization.
    x = jax.random.normal(kx, (B, S, H), dtype=jnp.float32).astype(jnp.bfloat16)
    gate_w = (jax.random.normal(kg, (H, I), dtype=jnp.float32) * (1.0 / H ** 0.5)).astype(jnp.bfloat16)
    up_w = (jax.random.normal(ku, (H, I), dtype=jnp.float32) * (1.0 / H ** 0.5)).astype(jnp.bfloat16)
    down_w = (jax.random.normal(kd, (I, H), dtype=jnp.float32) * (1.0 / I ** 0.5)).astype(jnp.bfloat16)

    out = llama_mlp(x, gate_w, up_w, down_w)
    out = jax.block_until_ready(out)

    ref = _reference_mlp(x.astype(jnp.float32), gate_w.astype(jnp.float32),
                         up_w.astype(jnp.float32), down_w.astype(jnp.float32))

    assert out.shape == (B, S, H)
    assert out.dtype == x.dtype
    assert jnp.allclose(out.astype(jnp.float32), ref, atol=3e-2, rtol=3e-2), "mismatch vs reference"

    print("KERNEL_OK")
</pallas_src>

<mosaic_0001>
module attributes {stable_mosaic.version = 11 : i64} {
  func.func @_llama_mlp_kernel(%arg0: i32, %arg1: i32, %arg2: memref<16x32xbf16, #tpu.memory_space<vmem>>, %arg3: memref<32x64xbf16, #tpu.memory_space<vmem>>, %arg4: memref<32x64xbf16, #tpu.memory_space<vmem>>, %arg5: memref<64x32xbf16, #tpu.memory_space<vmem>>, %arg6: memref<16x32xbf16, #tpu.memory_space<vmem>>, %arg7: memref<16x32xf32, #tpu.memory_space<vmem>>) attributes {dimension_semantics = [#tpu.dimension_semantics<parallel>, #tpu.dimension_semantics<arbitrary>], iteration_bounds = array<i64: 1, 1>, scalar_prefetch = 0 : i64, scratch_operands = 1 : i64, tpu.core_type = #tpu.core_type<tc>, window_params = [{transform_indices = @transform_0, window_bounds = array<i64: 16, 32>}, {transform_indices = @transform_1, window_bounds = array<i64: 32, 64>}, {transform_indices = @transform_2, window_bounds = array<i64: 32, 64>}, {transform_indices = @transform_3, window_bounds = array<i64: 64, 32>}, {transform_indices = @transform_4, window_bounds = array<i64: 16, 32>}]} {
    %c0_i32 = arith.constant 0 : i32
    %0 = arith.cmpi eq, %arg1, %c0_i32 : i32
    %1 = arith.extui %0 : i1 to i32
    %c0_i32_0 = arith.constant 0 : i32
    %2 = arith.cmpi ne, %1, %c0_i32_0 : i32
    scf.if %2 {
      %cst_17 = arith.constant 0.000000e+00 : f32
      %24 = vector.broadcast %cst_17 : f32 to vector<16x32xf32>
      %c0_18 = arith.constant 0 : index
      %c0_19 = arith.constant 0 : index
      %25 = vector.load %arg7[%c0_18, %c0_19] : memref<16x32xf32, #tpu.memory_space<vmem>>, vector<16x32xf32>
      tpu.vector_store %arg7[%c0_18, %c0_19], %24 {strides = array<i32>} : memref<16x32xf32, #tpu.memory_space<vmem>>, vector<16x32xf32>,
    } else {
    }
    %c0 = arith.constant 0 : index
    %c0_1 = arith.constant 0 : index
    %3 = vector.load %arg2[%c0, %c0_1] : memref<16x32xbf16, #tpu.memory_space<vmem>>, vector<16x32xbf16>
    %c0_2 = arith.constant 0 : index
    %c0_3 = arith.constant 0 : index
    %4 = vector.load %arg3[%c0_2, %c0_3] : memref<32x64xbf16, #tpu.memory_space<vmem>>, vector<32x64xbf16>
    %cst = arith.constant dense<0.000000e+00> : vector<16x64xf32>
    %5 = tpu.matmul %3, %4, %cst {dimension_numbers = #tpu.dot_dimension_numbers<[1], [0], [0], [1], [0, 0, 1, 1], [], []>} : vector<16x32xbf16>, vector<32x64xbf16>, vector<16x64xf32> -> vector<16x64xf32>
    %c0_4 = arith.constant 0 : index
    %c0_5 = arith.constant 0 : index
    %6 = vector.load %arg4[%c0_4, %c0_5] : memref<32x64xbf16, #tpu.memory_space<vmem>>, vector<32x64xbf16>
    %cst_6 = arith.constant dense<0.000000e+00> : vector<16x64xf32>
    %7 = tpu.matmul %3, %6, %cst_6 {dimension_numbers = #tpu.dot_dimension_numbers<[1], [0], [0], [1], [0, 0, 1, 1], [], []>} : vector<16x32xbf16>, vector<32x64xbf16>, vector<16x64xf32> -> vector<16x64xf32>
    %8 = arith.negf %5 : vector<16x64xf32>
    %9 = math.exp %8 : vector<16x64xf32>
    %cst_7 = arith.constant 1.000000e+00 : f32
    %10 = vector.broadcast %cst_7 : f32 to vector<16x64xf32>
    %11 = arith.addf %10, %9 : vector<16x64xf32>
    %12 = arith.divf %10, %11 : vector<16x64xf32>
    %13 = arith.mulf %5, %12 : vector<16x64xf32>
    %14 = arith.mulf %13, %7 : vector<16x64xf32>
    %c0_8 = arith.constant 0 : index
    %c0_9 = arith.constant 0 : index
    %15 = vector.load %arg7[%c0_8, %c0_9] : memref<16x32xf32, #tpu.memory_space<vmem>>, vector<16x32xf32>
    %16 = arith.truncf %14 : vector<16x64xf32> to vector<16x64xbf16>
    %c0_10 = arith.constant 0 : index
    %c0_11 = arith.constant 0 : index
    %17 = vector.load %arg5[%c0_10, %c0_11] : memref<64x32xbf16, #tpu.memory_space<vmem>>, vector<64x32xbf16>
    %cst_12 = arith.constant dense<0.000000e+00> : vector<16x32xf32>
    %18 = tpu.matmul %16, %17, %cst_12 {dimension_numbers = #tpu.dot_dimension_numbers<[1], [0], [0], [1], [0, 0, 1, 1], [], []>} : vector<16x64xbf16>, vector<64x32xbf16>, vector<16x32xf32> -> vector<16x32xf32>
    %19 = arith.addf %15, %18 : vector<16x32xf32>
    %c0_13 = arith.constant 0 : index
    %c0_14 = arith.constant 0 : index
    %20 = vector.load %arg7[%c0_13, %c0_14] : memref<16x32xf32, #tpu.memory_space<vmem>>, vector<16x32xf32>
    tpu.vector_store %arg7[%c0_13, %c0_14], %19 {strides = array<i32>} : memref<16x32xf32, #tpu.memory_space<vmem>>, vector<16x32xf32>,
    %c0_i32_15 = arith.constant 0 : i32
    %21 = arith.cmpi eq, %arg1, %c0_i32_15 : i32
    %22 = arith.extui %21 : i1 to i32
    %c0_i32_16 = arith.constant 0 : i32
    %23 = arith.cmpi ne, %22, %c0_i32_16 : i32
    scf.if %23 {
      %c0_17 = arith.constant 0 : index
      %c0_18 = arith.constant 0 : index
      %24 = vector.load %arg7[%c0_17, %c0_18] : memref<16x32xf32, #tpu.memory_space<vmem>>, vector<16x32xf32>
      %25 = arith.truncf %24 : vector<16x32xf32> to vector<16x32xbf16>
      %c0_19 = arith.constant 0 : index
      %c0_20 = arith.constant 0 : index
      %26 = vector.load %arg6[%c0_19, %c0_20] : memref<16x32xbf16, #tpu.memory_space<vmem>>, vector<16x32xbf16>
      tpu.vector_store %arg6[%c0_19, %c0_20], %25 {strides = array<i32>} : memref<16x32xbf16, #tpu.memory_space<vmem>>, vector<16x32xbf16>,
    } else {
    }
    return
  }
  func.func @transform_0(%arg0: i32, %arg1: i32) -> (i32, i32) {
    %c0_i32 = arith.constant 0 : i32
    %c0_i32_0 = arith.constant 0 : i32
    return %arg0, %c0_i32 : i32, i32
  }
  func.func @transform_1(%arg0: i32, %arg1: i32) -> (i32, i32) {
    %c0_i32 = arith.constant 0 : i32
    %c0_i32_0 = arith.constant 0 : i32
    return %c0_i32, %arg1 : i32, i32
  }
  func.func @transform_2(%arg0: i32, %arg1: i32) -> (i32, i32) {
    %c0_i32 = arith.constant 0 : i32
    %c0_i32_0 = arith.constant 0 : i32
    return %c0_i32, %arg1 : i32, i32
  }
  func.func @transform_3(%arg0: i32, %arg1: i32) -> (i32, i32) {
    %c0_i32 = arith.constant 0 : i32
    %c0_i32_0 = arith.constant 0 : i32
    return %arg1, %c0_i32 : i32, i32
  }
  func.func @transform_4(%arg0: i32, %arg1: i32) -> (i32, i32) {
    %c0_i32 = arith.constant 0 : i32
    %c0_i32_0 = arith.constant 0 : i32
    return %arg0, %c0_i32 : i32, i32
  }
}

</mosaic_0001>

<bundles_post_ra>
// kernel: llama_mlp.1
= control target key start
LH: loop header
LB: loop body
LE: loop exit
PB: predicated region body
PF: predicated region fallthrough
CT: control target
= control target key end

     0   :  { %s377_s0 = inlined_call_operand.vmem [shape: bf16[16,32], index: 0, kind: input, shape index: {}]   ;;  %s378_s1 = inlined_call_operand.vmem [shape: bf16[32,64], index: 1, kind: input, shape index: {}]   ;;  %s379_s2 = inlined_call_operand.vmem [shape: bf16[32,64], index: 2, kind: input, shape index: {}]   ;;  %s380_s3 = inlined_call_operand.vmem [shape: bf16[64,32], index: 3, kind: input, shape index: {}]   ;;  %s381_s4 = inlined_call_operand.hbm [shape: bf16[16,32], index: 4, kind: output, shape index: {}]  }
   0x1   :  { %v267_v0 = vld [vmem:[%s378_s1 + $0x8] sm:$0xff] }
   0x2   :  { %v269_v1 = vld [vmem:[%s379_s2 + $0x8] sm:$0xff] }
   0x3   :  { %9 = vsyncpa [#allocation4], 0  ;;  %59 = vmatpush.bf16.msra.mxu0 %v267_v0  ;;  %v266_v2 = vld [vmem:[%s378_s1] sm:$0xff]  ;;  %89 = vmatpush.bf16.msra.mxu1 %v269_v1  ;;  %vm23_vm0 = vcmask 261120   ;;  %v273_v5 = vld [vmem:[%s380_s3 + $0x18] sm:$0xff]  ;;  %v312_v15 = vmov 0.0  }
   0x4   :  { %v268_v3 = vld [vmem:[%s379_s2] sm:$0xff]  ;;  %182 = vmatpush.bf16.msra.mxu2 %v273_v5  ;;  %v272_v6 = vld [vmem:[%s380_s3 + $0x10] sm:$0xff]  ;;  %v271_v9 = vld [vmem:[%s380_s3 + $0x8] sm:$0xff]  ;;  %24 = vst.msk [vmem:[#allocation2] sm:$0xff] %vm23_vm0, %v312_v15  ;;  %vm174_vm9 = vcmask 523264   ;;  %vm203_vm10 = vcmask 257024  }
   0x5   :  { %v265_v4 = vld [vmem:[%s377_s0] sm:$0xff]  ;;  %25 = vst.msk [vmem:[#allocation2 + $0x8] sm:$0xff] %vm23_vm0, %v312_v15  ;;  %s212_s7 = sshll.u32 %s381_s4, 4  ;;  %s314_s8 = smov 64   ;;  %s213_s7 = int_to_ptr.hbm [resolvable:$true] %s212_s7 }
   0x6   :  { %v270_v10 = vld [vmem:[%s380_s3] sm:$0xff]  ;;  %s313_s3 = smov [#allocation3]   ;;  %s315_s9 = smov 4  }
   0x7   :  { %60 = vmatpush.bf16.msra.mxu0 %v266_v2  ;;  %90 = vmatpush.bf16.msra.mxu1 %v268_v3  ;;  %s210_s30 = sshll.u32 %s313_s3, 4  ;;  %s211_s30 = int_to_ptr.vmem [resolvable:$true] %s210_s30 }
   0x8   :  { %183 = vmatpush.bf16.msra.mxu2 %v272_v6 }
   0xa   :  { %236 = vmatmul.msk.bf16.vlgmr.msra.gmra.mxu0 %vm23_vm0, %v265_v4  ;;  %245 = vmatmul.msk.bf16.vlgmr.msra.gmra.mxu1 %vm23_vm0, %v265_v4 }
   0xb   :  { %v139_v45 = vld [vmem:[#allocation2] sm:$0xff] }
   0xc   :  { %184 = vmatpush.bf16.msra.mxu2 %v271_v9  ;;  %v140_v48 = vld [vmem:[#allocation2 + $0x8] sm:$0xff] }
  0x10   :  { %185 = vmatpush.bf16.msra.mxu2 %v270_v10 }
  0x87   :  { %v62_v7 = vpop.f32.mrf.mxu0  ;;  %v92_v27 = vpop.f32.mrf.mxu1 }
  0x88   :  { %v246_v8 = vmul.f32 -1.442695, %v62_v7 }
  0x8a   :  { %278 = vpow2.f32 %v246_v8 }
  0x8f   :  { %v64_v11 = vpop.f32.mrf.mxu0  ;;  %v94_v41 = vpop.f32.mrf.mxu1 }
  0x90   :  { %v279_v12 = vpop.eup %278  ;;  %v247_v13 = vmul.f32 -1.442695, %v64_v11 }
  0x91   :  { %v103_v14 = vadd.f32 1.0, %v279_v12 }
  0x92   :  { %280 = vpow2.f32 %v247_v13 }
  0x93   :  { %282 = vrcp.f32 %v103_v14  ;;  %v116_v24 = vand.u32 2147483648, %v103_v14  ;;  %vm110_vm2 = vweird.f32 %v103_v14  ;;  %v114_v25 = vand.u32 2147483647, %v103_v14 }
  0x95   :  { %v117_v30 = vor.u32 1.1754944e-38, %v116_v24  ;;  %vm115_vm4 = vcmp.eq.f32.partialorder %v114_v25, 8.507059e+37 }
  0x98   :  { %v281_v16 = vpop.eup %280 }
  0x99   :  { %v283_v17 = vpop.eup %282  ;;  %v104_v18 = vadd.f32 1.0, %v281_v16 }
  0x9a   :  { %v106_v19 = vmul.f32 %v283_v17, %v103_v14  ;;  %vm111_vm1 = vweird.f32 %v283_v17 }
  0x9b   :  { %284 = vrcp.f32 %v104_v18  ;;  %vm112_vm3 = vmor %vm110_vm2, %vm111_vm1  ;;  %v131_v31 = vand.u32 2147483648, %v104_v18  ;;  %v129_v33 = vand.u32 2147483647, %v104_v18  ;;  %vm125_vm6 = vweird.f32 %v104_v18 }
  0x9c   :  { %v107_v20 = vsub.f32 1.0, %v106_v19 }
  0x9d   :  { %v132_v36 = vor.u32 1.1754944e-38, %v131_v31  ;;  %vm130_vm8 = vcmp.eq.f32.partialorder %v129_v33, 8.507059e+37 }
  0x9e   :  { %v108_v21 = vmul.f32 %v283_v17, %v107_v20 }
  0xa0   :  { %v109_v22 = vadd.f32 %v283_v17, %v108_v21 }
  0xa1   :  { %v285_v23 = vpop.eup %284 }
  0xa2   :  { %v121_v26 = vmul.f32 %v285_v23, %v104_v18  ;;  %v113_v28 = vsel %vm112_vm3, %v283_v17, %v109_v22  ;;  %vm126_vm5 = vweird.f32 %v285_v23 }
  0xa3   :  { %v118_v34 = vsel %vm115_vm4, %v117_v30, %v113_v28  ;;  %vm127_vm7 = vmor %vm125_vm6, %vm126_vm5 }
  0xa4   :  { %v122_v29 = vsub.f32 1.0, %v121_v26  ;;  %v135_v37 = vmul.f32 %v118_v34, %v62_v7 }
  0xa6   :  { %v123_v32 = vmul.f32 %v285_v23, %v122_v29  ;;  %v137_v42 = vmul.f32 %v135_v37, %v92_v27 }
  0xa8   :  { %v124_v35 = vadd.f32 %v285_v23, %v123_v32 }
  0xaa   :  { %v128_v38 = vsel %vm127_vm7, %v285_v23, %v124_v35 }
  0xab   :  { %v133_v39 = vsel %vm130_vm8, %v132_v36, %v128_v38 }
  0xac   :  { %v136_v40 = vmul.f32 %v133_v39, %v64_v11 }
  0xae   :  { %v138_v43 = vmul.f32 %v136_v40, %v94_v41 }
  0xb0   :  { %v141_v44 = vpack.c.bf16 %v138_v43, %v137_v42 }
  0xb2   :  { %264 = vmatmul.msk.bf16.vlgmr.msra.gmra.mxu2 %vm174_vm9, %v141_v44 }
 0x135   :  { %v187_v46 = vpop.f32.mrf.mxu2 }
 0x136   :  { %v192_v47 = vadd.f32 %v187_v46, %v139_v45 }
 0x138   :  { %194 = vst.msk [vmem:[#allocation2] sm:$0xff] %vm23_vm0, %v192_v47 }
 0x13d   :  { %v189_v49 = vpop.f32.mrf.mxu2 }
 0x13e   :  { %v193_v50 = vadd.f32 %v189_v49, %v140_v48 }
 0x13f   :  { %v199_v51 = vld [vmem:[#allocation2] sm:$0xff] }
 0x140   :  { %195 = vst.msk [vmem:[#allocation2 + $0x8] sm:$0xff] %vm23_vm0, %v193_v50  ;;  %v201_v52 = vpack.c.bf16 %v199_v51, %v199_v51 }
 0x142   :  { %204 = vst.msk [vmem:[#allocation3] sm:$0xf] %vm203_vm10, %v201_v52 }
 0x147   :  { %v200_v53 = vld [vmem:[#allocation2 + $0x8] sm:$0xff] }
 0x148   :  { %v202_v54 = vpack.c.bf16 %v200_v53, %v200_v53 }
 0x14a   :  { %205 = vst.msk [vmem:[#allocation3 + $0x4] sm:$0xf] %vm203_vm10, %v202_v54 }
 0x14b   :  { %218 = dma.vmem_to_hbm [thread:$0]  %s211_s30, 128, %s213_s7, [#allocation4], %s314_s8, %s314_s8, %s315_s9  }
 0x14c   :  { %310 = dma.done.wait [#allocation4], 128  }
 0x14d   :  { %311 = vsyncadd [#allocation4], 4294967168 }
 0x14e   :  { %223 = vsyncpa [#allocation4], 1 }

</bundles_post_ra>
